<compile_context>
chip_gen: v5e
topology: v5e:2x2
jax: 0.10.0
libtpu: 0.0.40
codegen_flags: <defaults>
</compile_context>

<pallas_src>
import jax
import jax.numpy as jnp
from jax import lax
from jax.experimental import pallas as pl
from jax.experimental.pallas import tpu as pltpu


def _ln_relu_lane(x, gamma, beta, eps=1e-5):
    """Fused LayerNorm + ReLU over the FEATURE axis (axis 0) of a lane-dense
    (D, tn) tile (features on sublanes, nodes on lanes).  Matches PyTorch
    nn.LayerNorm: biased variance, eps inside the rsqrt.  Single-pass stats
    (var = E[x^2] - mu^2); rsqrt runs on the EUP slot; gamma/beta are (D, 1)
    per-feature columns broadcast over lanes."""
    mu = jnp.mean(x, axis=0, keepdims=True)            # (1, tn)
    ex2 = jnp.mean(x * x, axis=0, keepdims=True)       # (1, tn)
    rinv = lax.rsqrt(ex2 - mu * mu + eps)              # (1, tn)  EUP
    return jnp.maximum((x - mu) * (gamma * rinv) + beta, 0.0)


def mlp_kernel(x_ref, wsq_ref, w2_ref, vecs_ref, b2_ref, o_ref):
    # Per-feature parameter columns, each (D, 1) f32 (static lane slices).
    vecs = vecs_ref[...]                               # (D, 8) f32
    g0, be0, b0 = vecs[:, 0:1], vecs[:, 1:2], vecs[:, 2:3]
    g1, be1, b1 = vecs[:, 3:4], vecs[:, 4:5], vecs[:, 5:6]
    g2, be2 = vecs[:, 6:7], vecs[:, 7:8]

    # Lane-dense transpose of the (tn, D) bf16 node tile, done on the MXU:
    # xT[d, n] = sum_m I[d, m] * x[n, m]  (NT dot; exact, f32 accumulation).
    xT = lax.dot_general(
        wsq_ref[0], x_ref[...],
        (((1,), (1,)), ((), ())),
        preferred_element_type=jnp.float32)            # (D, tn) f32

    # --- init_activate: LayerNorm -> ReLU (dropout is identity in eval) ---
    h = _ln_relu_lane(xT, g0, be0)

    # --- layer 0: Linear(D -> D), then LayerNorm -> ReLU ---
    h = jnp.dot(wsq_ref[1], h.astype(jnp.bfloat16),
                preferred_element_type=jnp.float32) + b0
    h = _ln_relu_lane(h, g1, be1)

    # --- layer 1: Linear(D -> D), then LayerNorm -> ReLU ---
    h = jnp.dot(wsq_ref[2], h.astype(jnp.bfloat16),
                preferred_element_type=jnp.float32) + b1
    h = _ln_relu_lane(h, g2, be2)

    # --- layer 2: Linear(D -> out_d), no activation ---
    # Computed lane-dense (out_d, tn), then the small f32 tile is transposed
    # back so the store lands directly in the module's (N, out_d) row layout.
    out = jnp.dot(w2_ref[...], h.astype(jnp.bfloat16),
                  preferred_element_type=jnp.float32) + b2_ref[...]  # (out_d, tn)
    o_ref[...] = jnp.transpose(out).astype(o_ref.dtype)              # (tn, out_d)

    # TODO(synk): training-mode dropout would need pltpu.prng_seed /
    # pltpu.stateful_bernoulli; eval mode (identity) is what is implemented.


def mlp_forward(x, params, *, tn=1024):
    """x: (N, D) -> (N, output_d), same dtype as x.  tn = nodes per grid tile
    (multiple of 8, ideally of 128; sweep 512-2048 for large N).  Arbitrary N
    is handled by the last partial grid block (its garbage columns never mix
    with valid ones — LN and the matmuls are per-node — and are masked out of
    the output store)."""
    (w0, b0, w1, b1, w2, b2, g0, be0, g1, be1, g2, be2) = params
    N, D = x.shape
    out_d = w2.shape[1]
    # Shared (D,) LayerNorm before and after the first Linear requires this.
    assert w0.shape == (D, D) and w1.shape == (D, D), \
        "kernel assumes input_d == hidden_d (init_activate + norm='layer')"

    if N <= tn:
        tn = N                      # single full block (always a legal shape)
    else:
        assert tn % 8 == 0, "tn must be a multiple of 8"
    n_tiles = pl.cdiv(N, tn)

    # ---- pack parameters (weights in bf16 for the MXU; vectors in f32) ----
    eye = jnp.eye(D, dtype=w0.dtype)
    wsq = jnp.stack([eye, w0.T, w1.T]).astype(jnp.bfloat16)         # (3, D, D)
    w2t = w2.T.astype(jnp.bfloat16)                                 # (out_d, D)
    vecs = jnp.stack([g0, be0, b0, g1, be1, b1, g2, be2],
                     axis=1).astype(jnp.float32)                    # (D, 8)
    b2c = b2.reshape(out_d, 1).astype(jnp.float32)                  # (out_d, 1)

    grid = (n_tiles,)
    in_specs = [
        pl.BlockSpec((tn, D), lambda i: (i, 0)),        # node-row tile of x
        pl.BlockSpec(wsq.shape, lambda i: (0, 0, 0)),   # constant-index full
        pl.BlockSpec(w2t.shape, lambda i: (0, 0)),      #  blocks: DMA'd once
        pl.BlockSpec(vecs.shape, lambda i: (0, 0)),
        pl.BlockSpec(b2c.shape, lambda i: (0, 0)),
    ]
    out_specs = pl.BlockSpec((tn, out_d), lambda i: (i, 0))

    return pl.pallas_call(
        mlp_kernel,
        out_shape=jax.ShapeDtypeStruct((N, out_d), x.dtype),
        grid_spec=pltpu.PrefetchScalarGridSpec(
            num_scalar_prefetch=0,
            grid=grid,
            in_specs=in_specs,
            out_specs=out_specs,
        ),
        compiler_params=pltpu.CompilerParams(
            dimension_semantics=("parallel",)),
    )(x, wsq, w2t, vecs, b2c)


def init_params(key, input_d, hidden_d, output_d):
    """Weights: xavier_normal (matching MLP.reset_params), stored as (in, out).
    Biases / LayerNorm affine params get small random values (the module would
    use 0 / 1 / 0) so every packed parameter slot is exercised."""
    k0, k1, k2, kb = jax.random.split(key, 4)

    def xavier_normal(k, fan_in, fan_out):
        std = (2.0 / (fan_in + fan_out)) ** 0.5
        return (jax.random.normal(k, (fan_out, fan_in), jnp.float32) * std).T

    w0 = xavier_normal(k0, input_d, hidden_d)
    w1 = xavier_normal(k1, hidden_d, hidden_d)
    w2 = xavier_normal(k2, hidden_d, output_d)

    kb1, kb2, kb3, kg = jax.random.split(kb, 4)
    b0 = 0.1 * jax.random.normal(kb1, (hidden_d,), jnp.float32)
    b1 = 0.1 * jax.random.normal(kb2, (hidden_d,), jnp.float32)
    b2 = 0.1 * jax.random.normal(kb3, (output_d,), jnp.float32)

    kgs = jax.random.split(kg, 6)
    g0 = 1.0 + 0.1 * jax.random.normal(kgs[0], (hidden_d,), jnp.float32)
    be0 = 0.1 * jax.random.normal(kgs[1], (hidden_d,), jnp.float32)
    g1 = 1.0 + 0.1 * jax.random.normal(kgs[2], (hidden_d,), jnp.float32)
    be1 = 0.1 * jax.random.normal(kgs[3], (hidden_d,), jnp.float32)
    g2 = 1.0 + 0.1 * jax.random.normal(kgs[4], (hidden_d,), jnp.float32)
    be2 = 0.1 * jax.random.normal(kgs[5], (hidden_d,), jnp.float32)

    return (w0, b0, w1, b1, w2, b2, g0, be0, g1, be1, g2, be2)


def _layernorm_rows(x, gamma, beta, eps=1e-5):
    mu = jnp.mean(x, axis=-1, keepdims=True)
    var = jnp.mean((x - mu) ** 2, axis=-1, keepdims=True)
    return (x - mu) * lax.rsqrt(var + eps) * gamma + beta


def mlp_reference(x, params):
    """Pure-JAX f32 reference of the same forward pass (eval mode)."""
    (w0, b0, w1, b1, w2, b2, g0, be0, g1, be1, g2, be2) = params
    h = x.astype(jnp.float32)
    h = jnp.maximum(_layernorm_rows(h, g0, be0), 0.0)
    h = h @ w0 + b0
    h = jnp.maximum(_layernorm_rows(h, g1, be1), 0.0)
    h = h @ w1 + b1
    h = jnp.maximum(_layernorm_rows(h, g2, be2), 0.0)
    return h @ w2 + b2


if __name__ == "__main__":
    INPUT_D = 32    # == HIDDEN_D (required with init_activate=True, norm='layer')
    HIDDEN_D = 32
    OUTPUT_D = 16
    N = 512         # number of nodes / rows

    key = jax.random.PRNGKey(0)
    kx, kp = jax.random.split(key)
    # bf16 node features (kernel keeps LayerNorm/ReLU math in f32 internally).
    x = jax.random.normal(kx, (N, INPUT_D), jnp.float32).astype(jnp.bfloat16)
    params = init_params(kp, INPUT_D, HIDDEN_D, OUTPUT_D)

    # tn=256 -> grid=(2,): small N demo, but both v7x TensorCores get a tile.
    # For large N keep the default tn=1024 (or sweep 512-2048).
    out = mlp_forward(x, params, tn=256)
    out = jax.block_until_ready(out)

    ref = mlp_reference(x, params)
    assert out.shape == (N, OUTPUT_D)
    assert out.dtype == x.dtype
    err = jnp.max(jnp.abs(out.astype(jnp.float32) - ref))
    # bf16 weights/activations into the MXU + bf16 output rounding dominate
    # the difference vs the pure-f32 reference (~1-2% of the output scale).
    assert jnp.allclose(out.astype(jnp.float32), ref, atol=5e-2, rtol=5e-2), \
        f"mismatch vs JAX reference (max abs err {err})"
    print("KERNEL_OK")
</pallas_src>

<mosaic_0001>
module attributes {stable_mosaic.version = 11 : i64} {
  func.func @mlp_kernel(%arg0: i32, %arg1: memref<256x32xbf16, #tpu.memory_space<vmem>>, %arg2: memref<3x32x32xbf16, #tpu.memory_space<vmem>>, %arg3: memref<16x32xbf16, #tpu.memory_space<vmem>>, %arg4: memref<32x8xf32, #tpu.memory_space<vmem>>, %arg5: memref<16x1xf32, #tpu.memory_space<vmem>>, %arg6: memref<256x16xbf16, #tpu.memory_space<vmem>>) attributes {dimension_semantics = [#tpu.dimension_semantics<parallel>], iteration_bounds = array<i64: 2>, scalar_prefetch = 0 : i64, scratch_operands = 0 : i64, tpu.core_type = #tpu.core_type<tc>, window_params = [{transform_indices = @transform_0, window_bounds = array<i64: 256, 32>}, {pipeline_mode = #tpu.pipeline_mode<synchronous>, transform_indices = @transform_1, window_bounds = array<i64: 3, 32, 32>}, {pipeline_mode = #tpu.pipeline_mode<synchronous>, transform_indices = @transform_2, window_bounds = array<i64: 16, 32>}, {pipeline_mode = #tpu.pipeline_mode<synchronous>, transform_indices = @transform_3, window_bounds = array<i64: 32, 8>}, {pipeline_mode = #tpu.pipeline_mode<synchronous>, transform_indices = @transform_4, window_bounds = array<i64: 16, 1>}, {transform_indices = @transform_5, window_bounds = array<i64: 256, 16>}]} {
    %c0 = arith.constant 0 : index
    %c0_0 = arith.constant 0 : index
    %0 = vector.load %arg4[%c0, %c0_0] : memref<32x8xf32, #tpu.memory_space<vmem>>, vector<32x8xf32>
    %1 = vector.extract_strided_slice %0 {offsets = [0, 0], sizes = [32, 1], strides = [1, 1]} : vector<32x8xf32> to vector<32x1xf32>
    %2 = vector.extract_strided_slice %0 {offsets = [0, 1], sizes = [32, 1], strides = [1, 1]} : vector<32x8xf32> to vector<32x1xf32>
    %3 = vector.extract_strided_slice %0 {offsets = [0, 2], sizes = [32, 1], strides = [1, 1]} : vector<32x8xf32> to vector<32x1xf32>
    %4 = vector.extract_strided_slice %0 {offsets = [0, 3], sizes = [32, 1], strides = [1, 1]} : vector<32x8xf32> to vector<32x1xf32>
    %5 = vector.extract_strided_slice %0 {offsets = [0, 4], sizes = [32, 1], strides = [1, 1]} : vector<32x8xf32> to vector<32x1xf32>
    %6 = vector.extract_strided_slice %0 {offsets = [0, 5], sizes = [32, 1], strides = [1, 1]} : vector<32x8xf32> to vector<32x1xf32>
    %7 = vector.extract_strided_slice %0 {offsets = [0, 6], sizes = [32, 1], strides = [1, 1]} : vector<32x8xf32> to vector<32x1xf32>
    %8 = vector.extract_strided_slice %0 {offsets = [0, 7], sizes = [32, 1], strides = [1, 1]} : vector<32x8xf32> to vector<32x1xf32>
    %c0_1 = arith.constant 0 : index
    %c0_2 = arith.constant 0 : index
    %c0_3 = arith.constant 0 : index
    %9 = vector.load %arg2[%c0_1, %c0_2, %c0_3] : memref<3x32x32xbf16, #tpu.memory_space<vmem>>, vector<1x32x32xbf16>
    %10 = vector.shape_cast %9 : vector<1x32x32xbf16> to vector<32x32xbf16>
    %c0_4 = arith.constant 0 : index
    %c0_5 = arith.constant 0 : index
    %11 = vector.load %arg1[%c0_4, %c0_5] : memref<256x32xbf16, #tpu.memory_space<vmem>>, vector<256x32xbf16>
    %cst = arith.constant dense<0.000000e+00> : vector<32x256xf32>
    %12 = tpu.matmul %10, %11, %cst {dimension_numbers = #tpu.dot_dimension_numbers<[1], [1], [0], [0], [0, 0, 1, 0], [], []>} : vector<32x32xbf16>, vector<256x32xbf16>, vector<32x256xf32> -> vector<32x256xf32>
    %cst_6 = arith.constant dense<0.000000e+00> : vector<256xf32>
    %13 = vector.multi_reduction <add>, %12, %cst_6 [0] : vector<32x256xf32> to vector<256xf32>
    %14 = vector.shape_cast %13 : vector<256xf32> to vector<1x256xf32>
    %cst_7 = arith.constant 3.200000e+01 : f32
    %15 = vector.broadcast %cst_7 : f32 to vector<1x256xf32>
    %16 = arith.divf %14, %15 : vector<1x256xf32>
    %17 = arith.mulf %12, %12 : vector<32x256xf32>
    %cst_8 = arith.constant dense<0.000000e+00> : vector<256xf32>
    %18 = vector.multi_reduction <add>, %17, %cst_8 [0] : vector<32x256xf32> to vector<256xf32>
    %19 = vector.shape_cast %18 : vector<256xf32> to vector<1x256xf32>
    %cst_9 = arith.constant 3.200000e+01 : f32
    %20 = vector.broadcast %cst_9 : f32 to vector<1x256xf32>
    %21 = arith.divf %19, %20 : vector<1x256xf32>
    %22 = arith.mulf %16, %16 : vector<1x256xf32>
    %23 = arith.subf %21, %22 : vector<1x256xf32>
    %cst_10 = arith.constant 9.99999974E-6 : f32
    %24 = vector.broadcast %cst_10 : f32 to vector<1x256xf32>
    %25 = arith.addf %23, %24 : vector<1x256xf32>
    %26 = math.rsqrt %25 : vector<1x256xf32>
    %27 = vector.broadcast %16 : vector<1x256xf32> to vector<32x256xf32>
    %28 = arith.subf %12, %27 : vector<32x256xf32>
    %29 = vector.broadcast %1 : vector<32x1xf32> to vector<32x256xf32>
    %30 = vector.broadcast %26 : vector<1x256xf32> to vector<32x256xf32>
    %31 = arith.mulf %29, %30 : vector<32x256xf32>
    %32 = arith.mulf %28, %31 : vector<32x256xf32>
    %33 = vector.broadcast %2 : vector<32x1xf32> to vector<32x256xf32>
    %34 = arith.addf %32, %33 : vector<32x256xf32>
    %cst_11 = arith.constant 0.000000e+00 : f32
    %35 = vector.broadcast %cst_11 : f32 to vector<32x256xf32>
    %36 = arith.maximumf %34, %35 : vector<32x256xf32>
    %c1 = arith.constant 1 : index
    %c0_12 = arith.constant 0 : index
    %c0_13 = arith.constant 0 : index
    %37 = vector.load %arg2[%c1, %c0_12, %c0_13] : memref<3x32x32xbf16, #tpu.memory_space<vmem>>, vector<1x32x32xbf16>
    %38 = vector.shape_cast %37 : vector<1x32x32xbf16> to vector<32x32xbf16>
    %39 = arith.truncf %36 : vector<32x256xf32> to vector<32x256xbf16>
    %cst_14 = arith.constant dense<0.000000e+00> : vector<32x256xf32>
    %40 = tpu.matmul %38, %39, %cst_14 {dimension_numbers = #tpu.dot_dimension_numbers<[1], [0], [0], [1], [0, 0, 1, 1], [], []>} : vector<32x32xbf16>, vector<32x256xbf16>, vector<32x256xf32> -> vector<32x256xf32>
    %41 = vector.broadcast %3 : vector<32x1xf32> to vector<32x256xf32>
    %42 = arith.addf %40, %41 : vector<32x256xf32>
    %cst_15 = arith.constant dense<0.000000e+00> : vector<256xf32>
    %43 = vector.multi_reduction <add>, %42, %cst_15 [0] : vector<32x256xf32> to vector<256xf32>
    %44 = vector.shape_cast %43 : vector<256xf32> to vector<1x256xf32>
    %cst_16 = arith.constant 3.200000e+01 : f32
    %45 = vector.broadcast %cst_16 : f32 to vector<1x256xf32>
    %46 = arith.divf %44, %45 : vector<1x256xf32>
    %47 = arith.mulf %42, %42 : vector<32x256xf32>
    %cst_17 = arith.constant dense<0.000000e+00> : vector<256xf32>
    %48 = vector.multi_reduction <add>, %47, %cst_17 [0] : vector<32x256xf32> to vector<256xf32>
    %49 = vector.shape_cast %48 : vector<256xf32> to vector<1x256xf32>
    %cst_18 = arith.constant 3.200000e+01 : f32
    %50 = vector.broadcast %cst_18 : f32 to vector<1x256xf32>
    %51 = arith.divf %49, %50 : vector<1x256xf32>
    %52 = arith.mulf %46, %46 : vector<1x256xf32>
    %53 = arith.subf %51, %52 : vector<1x256xf32>
    %cst_19 = arith.constant 9.99999974E-6 : f32
    %54 = vector.broadcast %cst_19 : f32 to vector<1x256xf32>
    %55 = arith.addf %53, %54 : vector<1x256xf32>
    %56 = math.rsqrt %55 : vector<1x256xf32>
    %57 = vector.broadcast %46 : vector<1x256xf32> to vector<32x256xf32>
    %58 = arith.subf %42, %57 : vector<32x256xf32>
    %59 = vector.broadcast %4 : vector<32x1xf32> to vector<32x256xf32>
    %60 = vector.broadcast %56 : vector<1x256xf32> to vector<32x256xf32>
    %61 = arith.mulf %59, %60 : vector<32x256xf32>
    %62 = arith.mulf %58, %61 : vector<32x256xf32>
    %63 = vector.broadcast %5 : vector<32x1xf32> to vector<32x256xf32>
    %64 = arith.addf %62, %63 : vector<32x256xf32>
    %cst_20 = arith.constant 0.000000e+00 : f32
    %65 = vector.broadcast %cst_20 : f32 to vector<32x256xf32>
    %66 = arith.maximumf %64, %65 : vector<32x256xf32>
    %c2 = arith.constant 2 : index
    %c0_21 = arith.constant 0 : index
    %c0_22 = arith.constant 0 : index
    %67 = vector.load %arg2[%c2, %c0_21, %c0_22] : memref<3x32x32xbf16, #tpu.memory_space<vmem>>, vector<1x32x32xbf16>
    %68 = vector.shape_cast %67 : vector<1x32x32xbf16> to vector<32x32xbf16>
    %69 = arith.truncf %66 : vector<32x256xf32> to vector<32x256xbf16>
    %cst_23 = arith.constant dense<0.000000e+00> : vector<32x256xf32>
    %70 = tpu.matmul %68, %69, %cst_23 {dimension_numbers = #tpu.dot_dimension_numbers<[1], [0], [0], [1], [0, 0, 1, 1], [], []>} : vector<32x32xbf16>, vector<32x256xbf16>, vector<32x256xf32> -> vector<32x256xf32>
    %71 = vector.broadcast %6 : vector<32x1xf32> to vector<32x256xf32>
    %72 = arith.addf %70, %71 : vector<32x256xf32>
    %cst_24 = arith.constant dense<0.000000e+00> : vector<256xf32>
    %73 = vector.multi_reduction <add>, %72, %cst_24 [0] : vector<32x256xf32> to vector<256xf32>
    %74 = vector.shape_cast %73 : vector<256xf32> to vector<1x256xf32>
    %cst_25 = arith.constant 3.200000e+01 : f32
    %75 = vector.broadcast %cst_25 : f32 to vector<1x256xf32>
    %76 = arith.divf %74, %75 : vector<1x256xf32>
    %77 = arith.mulf %72, %72 : vector<32x256xf32>
    %cst_26 = arith.constant dense<0.000000e+00> : vector<256xf32>
    %78 = vector.multi_reduction <add>, %77, %cst_26 [0] : vector<32x256xf32> to vector<256xf32>
    %79 = vector.shape_cast %78 : vector<256xf32> to vector<1x256xf32>
    %cst_27 = arith.constant 3.200000e+01 : f32
    %80 = vector.broadcast %cst_27 : f32 to vector<1x256xf32>
    %81 = arith.divf %79, %80 : vector<1x256xf32>
    %82 = arith.mulf %76, %76 : vector<1x256xf32>
    %83 = arith.subf %81, %82 : vector<1x256xf32>
    %cst_28 = arith.constant 9.99999974E-6 : f32
    %84 = vector.broadcast %cst_28 : f32 to vector<1x256xf32>
    %85 = arith.addf %83, %84 : vector<1x256xf32>
    %86 = math.rsqrt %85 : vector<1x256xf32>
    %87 = vector.broadcast %76 : vector<1x256xf32> to vector<32x256xf32>
    %88 = arith.subf %72, %87 : vector<32x256xf32>
    %89 = vector.broadcast %7 : vector<32x1xf32> to vector<32x256xf32>
    %90 = vector.broadcast %86 : vector<1x256xf32> to vector<32x256xf32>
    %91 = arith.mulf %89, %90 : vector<32x256xf32>
    %92 = arith.mulf %88, %91 : vector<32x256xf32>
    %93 = vector.broadcast %8 : vector<32x1xf32> to vector<32x256xf32>
    %94 = arith.addf %92, %93 : vector<32x256xf32>
    %cst_29 = arith.constant 0.000000e+00 : f32
    %95 = vector.broadcast %cst_29 : f32 to vector<32x256xf32>
    %96 = arith.maximumf %94, %95 : vector<32x256xf32>
    %c0_30 = arith.constant 0 : index
    %c0_31 = arith.constant 0 : index
    %97 = vector.load %arg3[%c0_30, %c0_31] : memref<16x32xbf16, #tpu.memory_space<vmem>>, vector<16x32xbf16>
    %98 = arith.truncf %96 : vector<32x256xf32> to vector<32x256xbf16>
    %cst_32 = arith.constant dense<0.000000e+00> : vector<16x256xf32>
    %99 = tpu.matmul %97, %98, %cst_32 {dimension_numbers = #tpu.dot_dimension_numbers<[1], [0], [0], [1], [0, 0, 1, 1], [], []>} : vector<16x32xbf16>, vector<32x256xbf16>, vector<16x256xf32> -> vector<16x256xf32>
    %c0_33 = arith.constant 0 : index
    %c0_34 = arith.constant 0 : index
    %100 = vector.load %arg5[%c0_33, %c0_34] : memref<16x1xf32, #tpu.memory_space<vmem>>, vector<16x1xf32>
    %101 = vector.broadcast %100 : vector<16x1xf32> to vector<16x256xf32>
    %102 = arith.addf %99, %101 : vector<16x256xf32>
    %103 = tpu.transpose %102, [1, 0] : vector<16x256xf32> -> vector<256x16xf32>
    %104 = arith.truncf %103 : vector<256x16xf32> to vector<256x16xbf16>
    %c0_35 = arith.constant 0 : index
    %c0_36 = arith.constant 0 : index
    %105 = vector.load %arg6[%c0_35, %c0_36] : memref<256x16xbf16, #tpu.memory_space<vmem>>, vector<256x16xbf16>
    tpu.vector_store %arg6[%c0_35, %c0_36], %104 {strides = array<i32>} : memref<256x16xbf16, #tpu.memory_space<vmem>>, vector<256x16xbf16>,
    return
  }
  func.func @transform_0(%arg0: i32) -> (i32, i32) {
    %c0_i32 = arith.constant 0 : i32
    %c0_i32_0 = arith.constant 0 : i32
    return %arg0, %c0_i32 : i32, i32
  }
  func.func @transform_1(%arg0: i32) -> (i32, i32, i32) {
    %c0_i32 = arith.constant 0 : i32
    %c0_i32_0 = arith.constant 0 : i32
    %c0_i32_1 = arith.constant 0 : i32
    %c0_i32_2 = arith.constant 0 : i32
    return %c0_i32, %c0_i32_0, %c0_i32_1 : i32, i32, i32
  }
  func.func @transform_2(%arg0: i32) -> (i32, i32) {
    %c0_i32 = arith.constant 0 : i32
    %c0_i32_0 = arith.constant 0 : i32
    %c0_i32_1 = arith.constant 0 : i32
    return %c0_i32, %c0_i32_0 : i32, i32
  }
  func.func @transform_3(%arg0: i32) -> (i32, i32) {
    %c0_i32 = arith.constant 0 : i32
    %c0_i32_0 = arith.constant 0 : i32
    %c0_i32_1 = arith.constant 0 : i32
    return %c0_i32, %c0_i32_0 : i32, i32
  }
  func.func @transform_4(%arg0: i32) -> (i32, i32) {
    %c0_i32 = arith.constant 0 : i32
    %c0_i32_0 = arith.constant 0 : i32
    %c0_i32_1 = arith.constant 0 : i32
    return %c0_i32, %c0_i32_0 : i32, i32
  }
  func.func @transform_5(%arg0: i32) -> (i32, i32) {
    %c0_i32 = arith.constant 0 : i32
    %c0_i32_0 = arith.constant 0 : i32
    return %arg0, %c0_i32 : i32, i32
  }
}

</mosaic_0001>

<bundles_post_ra>
// kernel: tpu_custom_call.1
= control target key start
LH: loop header
LB: loop body
LE: loop exit
PB: predicated region body
PF: predicated region fallthrough
CT: control target
= control target key end

     0   :  { %s1634_s18 = smov 0   ;;  %s2054_s0 = inlined_call_operand.vmem [shape: bf16[512,32], index: 0, kind: input, shape index: {}]   ;;  %s2055_s1 = inlined_call_operand.vmem [shape: bf16[3,32,32], index: 1, kind: input, shape index: {}]   ;;  %s2056_s2 = inlined_call_operand.vmem [shape: bf16[16,32], index: 2, kind: input, shape index: {}]   ;;  %s2057_s3 = inlined_call_operand.vmem [shape: f32[32,8], index: 3, kind: input, shape index: {}]   ;;  %s2058_s4 = inlined_call_operand.vmem [shape: f32[16,1], index: 4, kind: input, shape index: {}]   ;;  %s2059_s5 = inlined_call_operand.vmem [shape: bf16[512,16], index: 5, kind: output, shape index: {}]  }
   0x1 LB: > { %s1298_s19 = sadd.s32 4294967295, %s1593_s18   ;;  %p1302_p0 = scmp.ge.s32.totalorder %s1593_s18, 1  ;;  %s1593_s18 = sphi %s1634_s18, %s15_s18  }
   0x2   : > { %p188_p1 = scmp.lt.s32.totalorder %s1593_s18, 3 }
   0x4   : > { %p189_p2 = pnand %p1302_p0, %p188_p1 }
   0x5   : > { %s1303_s20 = sshll.u32 (!%p189_p2), %s1298_s19, 5 }
   0x6   : > { %192 = sbr.rel (%p189_p2) target bundleno = 1144 (0x478), region = 40  ;;  %p217_p3 = scmp.lt.s32.totalorder (!%p189_p2), %s1303_s20, 63 }
   0xb   : > { %s2061_s20 = smov (!%p217_p3, %s1303_s20), 63  ;;  %vm359_vm0 = vcmask 261120   ;;  %v1683_v28 = vld [vmem:[%s2057_s3 + $0x10] sm:$0xff]  ;;  %v1688_v29 = vld [vmem:[%s2057_s3] sm:$0xff]  ;;  %v1595_v32 = vmov 0   ;;  %v1596_v33 = vmov 1  }
   0xc   : > { %s1304_s21 = sshll.u32 %s2061_s20, 2  ;;  %1465 = vset.pattern.permute.xlu1 %v1595_v32  ;;  %1464 = vset.pattern.permute.xlu0 %v1595_v32  ;;  %v1702_v36 = vld [vmem:[%s2057_s3 + $0x18] sm:$0xff]  ;;  %v1707_v37 = vld [vmem:[%s2057_s3 + $0x8] sm:$0xff]  ;;  %v1423_v38 = vld [vmem:[%s2055_s1] sm:$0xff]  ;;  %v1597_v44 = vmov 32.0  }
   0xd   : > { %s1650_s24 = scalar_lea.vmem %s2054_s0, %s1304_s21  ;;  %553 = vperm.xlu0 %1464, %v1683_v28   ;;  %543 = vperm.xlu1 %1465, %v1688_v29   ;;  %v1424_v39 = vld [vmem:[%s2055_s1 + $0x8] sm:$0xff]  ;;  %1573 = vrcp.f32 %v1597_v44  ;;  %s1985_s6 = scalar_lea.vmem %s2059_s5, %s1304_s21 }
   0xe   : > { %v1432_v0 = vld [vmem:[%s1650_s24 + $0x38] sm:$0xff]  ;;  %v1431_v4 = vld [vmem:[%s1650_s24 + $0x30] sm:$0xff]  ;;  %v1430_v8 = vld [vmem:[%s1650_s24 + $0x28] sm:$0xff]  ;;  %1466 = vset.pattern.permute.xlu2 %v1596_v33 }
   0xf   : > { %v1440_v1 = vld [vmem:[%s1650_s24 + $0x78] sm:$0xff]  ;;  %v388_v2 = vsel %vm359_vm0, %v1432_v0, 0  ;;  %v1439_v5 = vld [vmem:[%s1650_s24 + $0x70] sm:$0xff]  ;;  %v385_v6 = vsel %vm359_vm0, %v1431_v4, 0  ;;  %v1438_v9 = vld [vmem:[%s1650_s24 + $0x68] sm:$0xff]  ;;  %v382_v10 = vsel %vm359_vm0, %v1430_v8, 0  ;;  %586 = vperm.xlu2 %1466, %v1683_v28  }
  0x10   : > { %v412_v3 = vsel %vm359_vm0, %v1440_v1, 0  ;;  %414 = vmatpush.bf16.xpose.msra.mxu0 %v388_v2  ;;  %v409_v7 = vsel %vm359_vm0, %v1439_v5, 0  ;;  %v406_v11 = vsel %vm359_vm0, %v1438_v9, 0  ;;  %v1429_v12 = vld [vmem:[%s1650_s24 + $0x20] sm:$0xff]  ;;  %v1428_v16 = vld [vmem:[%s1650_s24 + $0x18] sm:$0xff]  ;;  %v1427_v20 = vld [vmem:[%s1650_s24 + $0x10] sm:$0xff] }
  0x11   : > { %433 = vmatpush.bf16.xpose.msra.mxu1 %v412_v3  ;;  %v1437_v13 = vld [vmem:[%s1650_s24 + $0x60] sm:$0xff]  ;;  %v379_v14 = vsel %vm359_vm0, %v1429_v12, 0  ;;  %v1436_v17 = vld [vmem:[%s1650_s24 + $0x58] sm:$0xff]  ;;  %v376_v18 = vsel %vm359_vm0, %v1428_v16, 0  ;;  %v1435_v21 = vld [vmem:[%s1650_s24 + $0x50] sm:$0xff]  ;;  %v373_v22 = vsel %vm359_vm0, %v1427_v20, 0 }
  0x12   : > { %v403_v15 = vsel %vm359_vm0, %v1437_v13, 0  ;;  %v400_v19 = vsel %vm359_vm0, %v1436_v17, 0  ;;  %v397_v23 = vsel %vm359_vm0, %v1435_v21, 0  ;;  %v1426_v24 = vld [vmem:[%s1650_s24 + $0x8] sm:$0xff]  ;;  %v1425_v30 = vld [vmem:[%s1650_s24] sm:$0xff] }
  0x13   : > { %v1434_v25 = vld [vmem:[%s1650_s24 + $0x48] sm:$0xff]  ;;  %v370_v26 = vsel %vm359_vm0, %v1426_v24, 0  ;;  %v1433_v31 = vld [vmem:[%s1650_s24 + $0x40] sm:$0xff]  ;;  %v367_v34 = vsel %vm359_vm0, %v1425_v30, 0  ;;  %v1574_v45 = vpop.eup %1573 }
  0x14   : > { %v394_v27 = vsel %vm359_vm0, %v1434_v25, 0  ;;  %v391_v35 = vsel %vm359_vm0, %v1433_v31, 0  ;;  %v471_v50 = vmul.f32 32.0, %v1574_v45  ;;  %vm475_vm1 = vweird.f32 %v1574_v45 }
  0x15   : > { %558 = vperm.xlu0 %1464, %v1702_v36   ;;  %548 = vperm.xlu1 %1465, %v1707_v37  }
  0x16   : > { %v472_v0 = vsub.f32 1.0, %v471_v50 }
  0x17   : > { %590 = vperm.xlu2 %1466, %v1702_v36  }
  0x18   : > { %415 = vmatpush.bf16.xpose.msra.mxu0 %v385_v6 }
  0x19   : > { %434 = vmatpush.bf16.xpose.msra.mxu1 %v409_v7 }
  0x1d   : > { %1467 = vset.pattern.permute.xlu0 %v1596_v33  ;;  %1468 = vset.pattern.permute.xlu1 %v1596_v33 }
  0x1e   : > { %578 = vperm.xlu0 %1467, %v1688_v29   ;;  %582 = vperm.xlu1 %1468, %v1707_v37  }
  0x20   : > { %416 = vmatpush.bf16.xpose.msra.mxu0 %v382_v10  ;;  %v473_v10 = vmul.f32 %v1574_v45, %v472_v0 }
  0x21   : > { %435 = vmatpush.bf16.xpose.msra.mxu1 %v406_v11 }
  0x28   : > { %417 = vmatpush.bf16.xpose.msra.mxu0 %v379_v14 }
  0x29   : > { %436 = vmatpush.bf16.xpose.msra.mxu1 %v403_v15 }
  0x30   : > { %418 = vmatpush.bf16.xpose.msra.mxu0 %v376_v18 }
  0x31   : > { %437 = vmatpush.bf16.xpose.msra.mxu1 %v400_v19  ;;  %v474_v19 = vadd.f32 %v1574_v45, %v473_v10 }
  0x33   : > { %v1764_v30 = vsel %vm475_vm1, %v1574_v45, %v474_v19 }
  0x38   : > { %419 = vmatpush.bf16.xpose.msra.mxu0 %v373_v22 }
  0x39   : > { %438 = vmatpush.bf16.xpose.msra.mxu1 %v397_v23 }
  0x40   : > { %420 = vmatpush.bf16.xpose.msra.mxu0 %v370_v26 }
  0x41   : > { %439 = vmatpush.bf16.xpose.msra.mxu1 %v394_v27 }
  0x48   : > { %421 = vmatpush.bf16.xpose.msra.mxu0 %v367_v34 }
  0x49   : > { %440 = vmatpush.bf16.xpose.msra.mxu1 %v391_v35 }
  0x4f   : > { %1379 = vmatmul.msk.bf16.vlgmr.msra.gmra.mxu0 %vm359_vm0, %v1423_v38 }
  0x50   : > { %1381 = vmatmul.msk.bf16.vlgmr.msra.gmra.mxu1 %vm359_vm0, %v1423_v38 }
  0x5f   : > { %1380 = vmatmul.msk.bf16.gmra.mxu0 %vm359_vm0, %v1424_v39 }
  0x60   : > { %1382 = vmatmul.msk.bf16.gmra.mxu1 %vm359_vm0, %v1424_v39 }
  0xcc   : > { %v1724_v40 = vpop.f32.mrf.mxu0 }
  0xcd   : > { %v1726_v41 = vpop.f32.mrf.mxu1  ;;  %v479_v51 = vmul.f32 %v1724_v40, %v1724_v40 }
  0xce   : > { %v480_v52 = vmul.f32 %v1726_v41, %v1726_v41 }
  0xd4   : > { %v1728_v42 = vpop.f32.mrf.mxu0 }
  0xd5   : > { %v1730_v43 = vpop.f32.mrf.mxu1  ;;  %v481_v48 = vmul.f32 %v1728_v42, %v1728_v42  ;;  %v452_v55 = vadd.f32 %v1728_v42, %v1724_v40 }
  0xd6   : > { %v482_v49 = vmul.f32 %v1730_v43, %v1730_v43  ;;  %v461_v56 = vadd.f32 %v1730_v43, %v1726_v41 }
  0xd7   : > { %v487_v57 = vadd.f32 %v481_v48, %v479_v51 }
  0xd8   : > { %v496_v58 = vadd.f32 %v482_v49, %v480_v52 }
  0xdc   : > { %v1732_v46 = vpop.f32.mrf.mxu0 }
  0xdd   : > { %v1734_v47 = vpop.f32.mrf.mxu1  ;;  %v483_v53 = vmul.f32 %v1732_v46, %v1732_v46  ;;  %v453_v59 = vadd.f32 %v452_v55, %v1732_v46 }
  0xde   : > { %v484_v54 = vmul.f32 %v1734_v47, %v1734_v47  ;;  %v462_v60 = vadd.f32 %v461_v56, %v1734_v47  ;;  %v554_v56 = vpop.permute.xlu0 %553 }
  0xdf   : > { %v488_v61 = vadd.f32 %v487_v57, %v483_v53  ;;  %v544_v57 = vpop.permute.xlu1 %543 }
  0xe0   : > { %v497_v62 = vadd.f32 %v496_v58, %v484_v54 }
  0xe4   : > { %v1754_v63 = vpop.f32.mrf.mxu0 }
  0xe5   : > { %v1756_v1 = vpop.f32.mrf.mxu1  ;;  %v454_v2 = vadd.f32 %v453_v59, %v1754_v63  ;;  %v485_v3 = vmul.f32 %v1754_v63, %v1754_v63 }
  0xe6   : > { %v463_v4 = vadd.f32 %v462_v60, %v1756_v1  ;;  %v486_v5 = vmul.f32 %v1756_v1, %v1756_v1 }
  0xe7   : > { %v455_v6 = vrot.slane %v454_v2, 4  ;;  %v489_v7 = vadd.f32 %v488_v61, %v485_v3  ;;  %v587_v3 = vpop.permute.xlu2 %586 }
  0xe8   : > { %v464_v8 = vrot.slane %v463_v4, 4  ;;  %v498_v9 = vadd.f32 %v497_v62, %v486_v5 }
  0xe9   : > { %v456_v11 = vadd.f32 %v455_v6, %v454_v2  ;;  %v490_v12 = vrot.slane %v489_v7, 4  ;;  %v549_v6 = vpop.permute.xlu1 %548 }
  0xea   : > { %v465_v13 = vadd.f32 %v464_v8, %v463_v4  ;;  %v499_v14 = vrot.slane %v498_v9, 4  ;;  %v559_v4 = vpop.permute.xlu0 %558 }
  0xeb   : > { %v457_v15 = vrot.slane %v456_v11, 2  ;;  %v491_v16 = vadd.f32 %v490_v12, %v489_v7 }
  0xec   : > { %v466_v17 = vrot.slane %v465_v13, 2  ;;  %v500_v18 = vadd.f32 %v499_v14, %v498_v9 }
  0xed   : > { %v458_v20 = vadd.f32 %v457_v15, %v456_v11  ;;  %v492_v21 = vrot.slane %v491_v16, 2 }
  0xee   : > { %v467_v22 = vadd.f32 %v466_v17, %v465_v13  ;;  %v501_v23 = vrot.slane %v500_v18, 2 }
  0xef   : > { %v459_v24 = vrot.slane %v458_v20, 1  ;;  %v493_v25 = vadd.f32 %v492_v21, %v491_v16 }
  0xf0   : > { %v468_v26 = vrot.slane %v467_v22, 1  ;;  %v502_v27 = vadd.f32 %v501_v23, %v500_v18 }
  0xf1   : > { %v460_v31 = vadd.f32 %v459_v24, %v458_v20  ;;  %v494_v33 = vrot.slane %v493_v25, 1 }
  0xf2   : > { %v469_v34 = vadd.f32 %v468_v26, %v467_v22  ;;  %v503_v35 = vrot.slane %v502_v27, 1 }
  0xf3   : > { %v1767_v38 = vmul.f32 %v1764_v30, %v460_v31  ;;  %v495_v39 = vadd.f32 %v494_v33, %v493_v25  ;;  %v591_v33 = vpop.permute.xlu2 %590 }
  0xf4   : > { %v1770_v44 = vmul.f32 %v1764_v30, %v469_v34  ;;  %v504_v48 = vadd.f32 %v503_v35, %v502_v27 }
  0xf5   : > { %v505_v49 = vmul.f32 %v495_v39, %v1764_v30  ;;  %v507_v50 = vmul.f32 %v1767_v38, %v1767_v38  ;;  %v539_v8 = vsub.f32 %v1754_v63, %v1767_v38  ;;  %v537_v12 = vsub.f32 %v1732_v46, %v1767_v38 }
  0xf6   : > { %v506_v45 = vmul.f32 %v504_v48, %v1764_v30  ;;  %v508_v51 = vmul.f32 %v1770_v44, %v1770_v44  ;;  %v540_v10 = vsub.f32 %v1756_v1, %v1770_v44  ;;  %v538_v14 = vsub.f32 %v1734_v47, %v1770_v44 }
  0xf7   : > { %v509_v52 = vsub.f32 %v505_v49, %v507_v50  ;;  %v533_v15 = vsub.f32 %v1724_v40, %v1767_v38  ;;  %v534_v16 = vsub.f32 %v1726_v41, %v1770_v44  ;;  %v535_v1 = vsub.f32 %v1728_v42, %v1767_v38  ;;  %v579_v40 = vpop.permute.xlu0 %578  ;;  %v583_v41 = vpop.permute.xlu1 %582 }
  0xf8   : > { %v510_v53 = vsub.f32 %v506_v45, %v508_v51  ;;  %v536_v46 = vsub.f32 %v1730_v43, %v1770_v44 }
  0xf9   : > { %v511_v54 = vadd.f32 1e-05, %v509_v52 }
  0xfa   : > { %v512_v55 = vadd.f32 1e-05, %v510_v53 }
  0xfb   : > { %1575 = vrsqrt.f32 %v511_v54  ;;  %vm519_vm4 = vweird.f32 %v511_v54 }
  0xfc   : > { %1577 = vrsqrt.f32 %v512_v55  ;;  %vm529_vm6 = vweird.f32 %v512_v55 }
 0x101   : > { %v1576_v58 = vpop.eup %1575 }
 0x102   : > { %v1578_v59 = vpop.eup %1577  ;;  %v514_v60 = vmul.f32 %v1576_v58, %v511_v54  ;;  %vm520_vm2 = vweird.f32 %v1576_v58 }
 0x103   : > { %v524_v61 = vmul.f32 %v1578_v59, %v512_v55  ;;  %vm530_vm3 = vweird.f32 %v1578_v59  ;;  %vm521_vm5 = vmor %vm519_vm4, %vm520_vm2 }
 0x104   : > { %v515_v62 = vmul.f32 %v1576_v58, %v514_v60  ;;  %vm531_vm7 = vmor %vm529_vm6, %vm530_vm3 }
 0x105   : > { %v525_v0 = vmul.f32 %v1578_v59, %v524_v61 }
 0x106   : > { %v516_v2 = vmul.f32 0.5, %v515_v62  ;;  %v1598_v62 = vmov 2  }
 0x107   : > { %v526_v5 = vmul.f32 0.5, %v525_v0  ;;  %1470 = vset.pattern.permute.xlu1 %v1598_v62  ;;  %1469 = vset.pattern.permute.xlu2 %v1598_v62 }
 0x108   : > { %v517_v7 = vsub.f32 1.5, %v516_v2  ;;  %623 = vperm.xlu1 %1470, %v1707_v37   ;;  %1471 = vset.pattern.permute.xlu0 %v1598_v62 }
 0x109   : > { %v527_v9 = vsub.f32 1.5, %v526_v5  ;;  %619 = vperm.xlu2 %1469, %v1688_v29   ;;  %631 = vperm.xlu0 %1471, %v1702_v36   ;;  %v1600_v5 = vmov 4  }
 0x10a   : > { %v518_v11 = vmul.f32 %v1576_v58, %v517_v7 }
 0x10b   : > { %v528_v13 = vmul.f32 %v1578_v59, %v527_v9 }
 0x10c   : > { %v522_v63 = vsel %vm521_vm5, %v1576_v58, %v518_v11 }
 0x10d   : > { %v532_v17 = vsel %vm531_vm7, %v1578_v59, %v528_v13  ;;  %v565_v18 = vmul.f32 %v554_v56, %v522_v63  ;;  %v561_v19 = vmul.f32 %v544_v57, %v522_v63  ;;  %v567_v20 = vmul.f32 %v559_v4, %v522_v63 }
 0x10e   : > { %v566_v21 = vmul.f32 %v554_v56, %v532_v17  ;;  %v562_v47 = vmul.f32 %v544_v57, %v532_v17  ;;  %v568_v22 = vmul.f32 %v559_v4, %v532_v17  ;;  %v563_v23 = vmul.f32 %v549_v6, %v522_v63 }
 0x10f   : > { %v573_v24 = vmul.f32 %v565_v18, %v537_v12  ;;  %v564_v25 = vmul.f32 %v549_v6, %v532_v17  ;;  %v575_v26 = vmul.f32 %v567_v20, %v539_v8  ;;  %v569_v27 = vmul.f32 %v561_v19, %v533_v15  ;;  %v1442_v6 = vld [vmem:[%s2055_s1 + $0x18] sm:$0xff] }
 0x110   : > { %v574_v31 = vmul.f32 %v566_v21, %v538_v14  ;;  %v576_v42 = vmul.f32 %v568_v22, %v540_v10  ;;  %v570_v34 = vmul.f32 %v562_v47, %v534_v16  ;;  %v571_v35 = vmul.f32 %v563_v23, %v535_v1 }
 0x111   : > { %v597_v43 = vadd.f32 %v587_v3, %v573_v24  ;;  %v599_v38 = vadd.f32 %v591_v33, %v575_v26  ;;  %v593_v39 = vadd.f32 %v579_v40, %v569_v27  ;;  %v572_v44 = vmul.f32 %v564_v25, %v536_v46  ;;  %627 = vperm.xlu2 %1469, %v1683_v28  }
 0x112   : > { %v598_v48 = vadd.f32 %v587_v3, %v574_v31  ;;  %v600_v49 = vadd.f32 %v591_v33, %v576_v42  ;;  %v594_v50 = vadd.f32 %v579_v40, %v570_v34  ;;  %v595_v45 = vadd.f32 %v583_v41, %v571_v35  ;;  %v1441_v3 = vld [vmem:[%s2055_s1 + $0x10] sm:$0xff]  ;;  %1474 = vset.pattern.permute.xlu0 %v1600_v5 }
 0x113   : > { %v596_v51 = vadd.f32 %v583_v41, %v572_v44  ;;  %v605_v52 = vmax.f32 %v597_v43, 0.0  ;;  %v607_v53 = vmax.f32 %v599_v38, 0.0  ;;  %v601_v56 = vmax.f32 %v593_v39, 0.0  ;;  %811 = vperm.xlu0 %1474, %v1683_v28  }
 0x114   : > { %v606_v54 = vmax.f32 %v598_v48, 0.0  ;;  %v608_v55 = vmax.f32 %v600_v49, 0.0  ;;  %v603_v57 = vmax.f32 %v595_v45, 0.0  ;;  %v602_v59 = vmax.f32 %v594_v50, 0.0 }
 0x115   : > { %v616_v58 = vpack.c.bf16 %v607_v53, %v605_v52  ;;  %v604_v60 = vmax.f32 %v596_v51, 0.0  ;;  %v1599_v4 = vmov 3  }
 0x116   : > { %v617_v61 = vpack.c.bf16 %v608_v55, %v606_v54  ;;  %v614_v0 = vpack.c.bf16 %v603_v57, %v601_v56  ;;  %1472 = vset.pattern.permute.xlu1 %v1599_v4 }
 0x117   : > { %656 = vmatpush.bf16.msra.mxu2 %v616_v58  ;;  %v615_v2 = vpack.c.bf16 %v604_v60, %v602_v59  ;;  %779 = vperm.xlu1 %1472, %v1683_v28  }
 0x118   : > { %675 = vmatpush.bf16.msra.mxu3 %v617_v61 }
 0x119   : > { %1473 = vset.pattern.permute.xlu2 %v1599_v4 }
 0x11a   : > { %783 = vperm.xlu2 %1473, %v1702_v36  }
 0x11b   : > { %657 = vmatpush.bf16.msra.mxu2 %v614_v0 }
 0x11c   : > { %676 = vmatpush.bf16.msra.mxu3 %v615_v2 }
 0x11e   : > { %1395 = vmatmul.msk.bf16.vlgmr.msra.gmra.mxu2 %vm359_vm0, %v1441_v3 }
 0x11f   : > { %1397 = vmatmul.msk.bf16.vlgmr.msra.gmra.mxu3 %vm359_vm0, %v1441_v3  ;;  %771 = vperm.xlu1 %1472, %v1688_v29  }
 0x122   : > { %775 = vperm.xlu2 %1473, %v1707_v37  }
 0x127   : > { %1475 = vset.pattern.permute.xlu1 %v1600_v5 }
 0x128   : > { %815 = vperm.xlu1 %1475, %v1702_v36  }
 0x12a   : > { %1476 = vset.pattern.permute.xlu2 %v1600_v5 }
 0x12b   : > { %803 = vperm.xlu2 %1476, %v1688_v29  }
 0x12e   : > { %1396 = vmatmul.msk.bf16.gmra.mxu2 %vm359_vm0, %v1442_v6 }
 0x12f   : > { %1398 = vmatmul.msk.bf16.gmra.mxu3 %vm359_vm0, %v1442_v6 }
 0x130   : > { %807 = vperm.xlu1 %1475, %v1707_v37  }
 0x163   : > { %v620_v11 = vpop.permute.xlu2 %619 }
 0x16b   : > { %v628_v16 = vpop.permute.xlu2 %627 }
 0x17a   : > { %v624_v12 = vpop.permute.xlu1 %623 }
 0x17b   : > { %v632_v21 = vpop.permute.xlu0 %631 }
 0x1a1   : > { %v659_v7 = vpop.f32.mrf.mxu2 }
 0x1a2   : > { %v678_v8 = vpop.f32.mrf.mxu3  ;;  %v1820_v1 = vadd.f32 %v659_v7, %v620_v11 }
 0x1a3   : > { %v1824_v17 = vadd.f32 %v678_v8, %v620_v11 }
 0x1a4   : > { %v708_v47 = vmul.f32 %v1820_v1, %v1820_v1 }
 0x1a5   : > { %v709_v40 = vmul.f32 %v1824_v17, %v1824_v17 }
 0x1a9   : > { %v661_v9 = vpop.f32.mrf.mxu2 }
 0x1aa   : > { %v680_v10 = vpop.f32.mrf.mxu3  ;;  %v1816_v14 = vadd.f32 %v661_v9, %v624_v12 }
 0x1ab   : > { %v1818_v63 = vadd.f32 %v680_v10, %v624_v12 }
 0x1ac   : > { %v710_v19 = vmul.f32 %v1816_v14, %v1816_v14  ;;  %v688_v22 = vadd.f32 %v1816_v14, %v1820_v1 }
 0x1ad   : > { %v711_v20 = vmul.f32 %v1818_v63, %v1818_v63  ;;  %v697_v24 = vadd.f32 %v1818_v63, %v1824_v17 }
 0x1ae   : > { %v716_v27 = vadd.f32 %v710_v19, %v708_v47 }
 0x1af   : > { %v725_v42 = vadd.f32 %v711_v20, %v709_v40 }
 0x1b1   : > { %v664_v13 = vpop.f32.mrf.mxu2 }
 0x1b2   : > { %v683_v15 = vpop.f32.mrf.mxu3  ;;  %v1822_v46 = vadd.f32 %v664_v13, %v628_v16  ;;  %v780_v13 = vpop.permute.xlu1 %779 }
 0x1b3   : > { %v1826_v18 = vadd.f32 %v683_v15, %v628_v16 }
 0x1b4   : > { %v712_v23 = vmul.f32 %v1822_v46, %v1822_v46  ;;  %v689_v41 = vadd.f32 %v688_v22, %v1822_v46 }
 0x1b5   : > { %v713_v25 = vmul.f32 %v1826_v18, %v1826_v18  ;;  %v698_v34 = vadd.f32 %v697_v24, %v1826_v18 }
 0x1b6   : > { %v717_v43 = vadd.f32 %v716_v27, %v712_v23 }
 0x1b7   : > { %v726_v44 = vadd.f32 %v725_v42, %v713_v25  ;;  %v784_v25 = vpop.permute.xlu2 %783 }
 0x1b9   : > { %v666_v26 = vpop.f32.mrf.mxu2 }
 0x1ba   : > { %v1845_v31 = vadd.f32 %v666_v26, %v632_v21  ;;  %v685_v33 = vpop.f32.mrf.mxu3  ;;  %v772_v26 = vpop.permute.xlu1 %771 }
 0x1bb   : > { %v1848_v35 = vadd.f32 %v685_v33, %v632_v21 }
 0x1bc   : > { %v690_v38 = vadd.f32 %v689_v41, %v1845_v31  ;;  %v714_v39 = vmul.f32 %v1845_v31, %v1845_v31 }
 0x1bd   : > { %v699_v48 = vadd.f32 %v698_v34, %v1848_v35  ;;  %v715_v49 = vmul.f32 %v1848_v35, %v1848_v35 }
 0x1be   : > { %v691_v50 = vrot.slane %v690_v38, 4  ;;  %v718_v45 = vadd.f32 %v717_v43, %v714_v39 }
 0x1bf   : > { %v700_v51 = vrot.slane %v699_v48, 4  ;;  %v727_v52 = vadd.f32 %v726_v44, %v715_v49  ;;  %v776_v39 = vpop.permute.xlu2 %775 }
 0x1c0   : > { %v692_v53 = vadd.f32 %v691_v50, %v690_v38  ;;  %v719_v54 = vrot.slane %v718_v45, 4 }
 0x1c1   : > { %v701_v55 = vadd.f32 %v700_v51, %v699_v48  ;;  %v728_v56 = vrot.slane %v727_v52, 4 }
 0x1c2   : > { %v693_v57 = vrot.slane %v692_v53, 2  ;;  %v720_v58 = vadd.f32 %v719_v54, %v718_v45  ;;  %v816_v48 = vpop.permute.xlu1 %815 }
 0x1c3   : > { %v702_v59 = vrot.slane %v701_v55, 2  ;;  %v729_v60 = vadd.f32 %v728_v56, %v727_v52 }
 0x1c4   : > { %v694_v61 = vadd.f32 %v693_v57, %v692_v53  ;;  %v721_v62 = vrot.slane %v720_v58, 2 }
 0x1c5   : > { %v703_v0 = vadd.f32 %v702_v59, %v701_v55  ;;  %v730_v2 = vrot.slane %v729_v60, 2 }
 0x1c6   : > { %v695_v3 = vrot.slane %v694_v61, 1  ;;  %v722_v4 = vadd.f32 %v721_v62, %v720_v58 }
 0x1c7   : > { %v704_v5 = vrot.slane %v703_v0, 1  ;;  %v731_v6 = vadd.f32 %v730_v2, %v729_v60 }
 0x1c8   : > { %v696_v7 = vadd.f32 %v695_v3, %v694_v61  ;;  %v723_v8 = vrot.slane %v722_v4, 1  ;;  %v804_v3 = vpop.permute.xlu2 %803 }
 0x1c9   : > { %v705_v9 = vadd.f32 %v704_v5, %v703_v0  ;;  %v732_v10 = vrot.slane %v731_v6, 1 }
 0x1ca   : > { %v706_v11 = vmul.f32 %v696_v7, %v1764_v30  ;;  %v724_v12 = vadd.f32 %v723_v8, %v722_v4 }
 0x1cb   : > { %v1858_v15 = vmul.f32 %v705_v9, %v1764_v30  ;;  %v733_v16 = vadd.f32 %v732_v10, %v731_v6 }
 0x1cc   : > { %v734_v19 = vmul.f32 %v724_v12, %v1764_v30  ;;  %v736_v20 = vmul.f32 %v706_v11, %v706_v11  ;;  %v768_v50 = vsub.f32 %v1845_v31, %v706_v11  ;;  %v764_v53 = vsub.f32 %v1816_v14, %v706_v11 }
 0x1cd   : > { %v735_v21 = vmul.f32 %v733_v16, %v1764_v30  ;;  %v737_v47 = vmul.f32 %v1858_v15, %v1858_v15  ;;  %v769_v51 = vsub.f32 %v1848_v35, %v1858_v15  ;;  %v765_v55 = vsub.f32 %v1818_v63, %v1858_v15 }
 0x1ce   : > { %v738_v22 = vsub.f32 %v734_v19, %v736_v20  ;;  %v762_v56 = vsub.f32 %v1820_v1, %v706_v11  ;;  %v763_v31 = vsub.f32 %v1824_v17, %v1858_v15  ;;  %v766_v58 = vsub.f32 %v1822_v46, %v706_v11  ;;  %v812_v1 = vpop.permute.xlu0 %811 }
 0x1cf   : > { %v739_v23 = vsub.f32 %v735_v21, %v737_v47  ;;  %v767_v35 = vsub.f32 %v1826_v18, %v1858_v15  ;;  %v808_v18 = vpop.permute.xlu1 %807 }
 0x1d0   : > { %v740_v40 = vadd.f32 1e-05, %v738_v22 }
 0x1d1   : > { %v741_v24 = vadd.f32 1e-05, %v739_v23 }
 0x1d2   : > { %1579 = vrsqrt.f32 %v740_v40  ;;  %vm748_vm10 = vweird.f32 %v740_v40 }
 0x1d3   : > { %1581 = vrsqrt.f32 %v741_v24  ;;  %vm758_vm12 = vweird.f32 %v741_v24 }
 0x1d8   : > { %v1580_v27 = vpop.eup %1579 }
 0x1d9   : > { %v1582_v41 = vpop.eup %1581  ;;  %v743_v33 = vmul.f32 %v1580_v27, %v740_v40  ;;  %vm749_vm8 = vweird.f32 %v1580_v27 }
 0x1da   : > { %v753_v42 = vmul.f32 %v1582_v41, %v741_v24  ;;  %vm759_vm9 = vweird.f32 %v1582_v41  ;;  %vm750_vm11 = vmor %vm748_vm10, %vm749_vm8 }
 0x1db   : > { %v744_v34 = vmul.f32 %v1580_v27, %v743_v33  ;;  %vm760_vm13 = vmor %vm758_vm12, %vm759_vm9 }
 0x1dc   : > { %v754_v43 = vmul.f32 %v1582_v41, %v753_v42  ;;  %v1601_v42 = vmov 5  }
 0x1dd   : > { %v745_v38 = vmul.f32 0.5, %v744_v34  ;;  %1478 = vset.pattern.permute.xlu0 %v1601_v42  ;;  %1479 = vset.pattern.permute.xlu1 %v1601_v42 }
 0x1de   : > { %v755_v44 = vmul.f32 0.5, %v754_v43  ;;  %848 = vperm.xlu0 %1478, %v1707_v37   ;;  %852 = vperm.xlu1 %1479, %v1683_v28  }
 0x1df   : > { %v746_v49 = vsub.f32 1.5, %v745_v38  ;;  %1477 = vset.pattern.permute.xlu2 %v1601_v42  ;;  %v1443_v38 = vld [vmem:[%s2055_s1 + $0x20] sm:$0xff] }
 0x1e0   : > { %v756_v45 = vsub.f32 1.5, %v755_v44  ;;  %844 = vperm.xlu2 %1477, %v1688_v29   ;;  %v1603_v44 = vmov 7  }
 0x1e1   : > { %v747_v52 = vmul.f32 %v1580_v27, %v746_v49 }
 0x1e2   : > { %v757_v54 = vmul.f32 %v1582_v41, %v756_v45 }
 0x1e3   : > { %v751_v57 = vsel %vm750_vm11, %v1580_v27, %v747_v52 }
 0x1e4   : > { %v761_v59 = vsel %vm760_vm13, %v1582_v41, %v757_v54  ;;  %v790_v14 = vmul.f32 %v780_v13, %v751_v57  ;;  %v792_v60 = vmul.f32 %v784_v25, %v751_v57  ;;  %v786_v61 = vmul.f32 %v772_v26, %v751_v57 }
 0x1e5   : > { %v791_v62 = vmul.f32 %v780_v13, %v761_v59  ;;  %v793_v0 = vmul.f32 %v784_v25, %v761_v59  ;;  %v787_v2 = vmul.f32 %v772_v26, %v761_v59  ;;  %v788_v63 = vmul.f32 %v776_v39, %v751_v57 }
 0x1e6   : > { %v789_v4 = vmul.f32 %v776_v39, %v761_v59  ;;  %v800_v5 = vmul.f32 %v792_v60, %v768_v50  ;;  %v794_v6 = vmul.f32 %v786_v61, %v762_v56  ;;  %v798_v7 = vmul.f32 %v790_v14, %v766_v58 }
 0x1e7   : > { %v801_v17 = vmul.f32 %v793_v0, %v769_v51  ;;  %v796_v8 = vmul.f32 %v788_v63, %v764_v53  ;;  %v795_v46 = vmul.f32 %v787_v2, %v763_v31  ;;  %v799_v9 = vmul.f32 %v791_v62, %v767_v35 }
 0x1e8   : > { %v824_v10 = vadd.f32 %v816_v48, %v800_v5  ;;  %v797_v11 = vmul.f32 %v789_v4, %v765_v55  ;;  %v818_v12 = vadd.f32 %v804_v3, %v794_v6  ;;  %v822_v15 = vadd.f32 %v812_v1, %v798_v7  ;;  %856 = vperm.xlu2 %1477, %v1702_v36  }
 0x1e9   : > { %v825_v16 = vadd.f32 %v816_v48, %v801_v17  ;;  %v820_v13 = vadd.f32 %v808_v18, %v796_v8  ;;  %v819_v19 = vadd.f32 %v804_v3, %v795_v46  ;;  %v823_v20 = vadd.f32 %v812_v1, %v799_v9  ;;  %v1444_v48 = vld [vmem:[%s2055_s1 + $0x28] sm:$0xff] }
 0x1ea   : > { %v832_v21 = vmax.f32 %v824_v10, 0.0  ;;  %v821_v47 = vadd.f32 %v808_v18, %v797_v11  ;;  %v830_v22 = vmax.f32 %v822_v15, 0.0  ;;  %v826_v25 = vmax.f32 %v818_v12, 0.0 }
 0x1eb   : > { %v833_v23 = vmax.f32 %v825_v16, 0.0  ;;  %v831_v40 = vmax.f32 %v823_v20, 0.0  ;;  %v828_v24 = vmax.f32 %v820_v13, 0.0  ;;  %v827_v41 = vmax.f32 %v819_v19, 0.0 }
 0x1ec   : > { %v841_v26 = vpack.c.bf16 %v832_v21, %v830_v22  ;;  %v829_v27 = vmax.f32 %v821_v47, 0.0  ;;  %v1602_v39 = vmov 6  }
 0x1ed   : > { %v842_v33 = vpack.c.bf16 %v833_v23, %v831_v40  ;;  %v839_v34 = vpack.c.bf16 %v828_v24, %v826_v25  ;;  %1482 = vset.pattern.permute.xlu0 %v1602_v39  ;;  %1480 = vset.pattern.permute.xlu1 %v1602_v39 }
 0x1ee   : > { %881 = vmatpush.bf16.msrb.mxu2 %v841_v26  ;;  %v840_v43 = vpack.c.bf16 %v829_v27, %v827_v41  ;;  %996 = vperm.xlu0 %1482, %v1688_v29  }
 0x1ef   : > { %900 = vmatpush.bf16.msrb.mxu3 %v842_v33  ;;  %1004 = vperm.xlu1 %1480, %v1683_v28  }
 0x1f0   : > { %1481 = vset.pattern.permute.xlu2 %v1602_v39 }
 0x1f1   : > { %1008 = vperm.xlu2 %1481, %v1702_v36  }
 0x1f2   : > { %882 = vmatpush.bf16.msrb.mxu2 %v839_v34 }
 0x1f3   : > { %901 = vmatpush.bf16.msrb.mxu3 %v840_v43 }
 0x1f5   : > { %1411 = vmatmul.msk.bf16.vlgmr.msrb.gmra.mxu2 %vm359_vm0, %v1443_v38 }
 0x1f6   : > { %1413 = vmatmul.msk.bf16.vlgmr.msrb.gmra.mxu3 %vm359_vm0, %v1443_v38  ;;  %1485 = vset.pattern.permute.xlu0 %v1603_v44 }
 0x1f7   : > { %1000 = vperm.xlu1 %1480, %v1707_v37   ;;  %1032 = vperm.xlu0 %1485, %v1707_v37  }
 0x1f9   : > { %1483 = vset.pattern.permute.xlu2 %v1603_v44 }
 0x1fa   : > { %1036 = vperm.xlu2 %1483, %v1683_v28  }
 0x1ff   : > { %1484 = vset.pattern.permute.xlu1 %v1603_v44  ;;  %1572 = vset.pattern.permute.xlu0 %v1595_v32 }
 0x200   : > { %1040 = vperm.xlu1 %1484, %v1702_v36  }
 0x202   : > { %1028 = vperm.xlu2 %1483, %v1688_v29  }
 0x205   : > { %1412 = vmatmul.msk.bf16.gmra.mxu2 %vm359_vm0, %v1444_v48 }
 0x206   : > { %1414 = vmatmul.msk.bf16.gmra.mxu3 %vm359_vm0, %v1444_v48 }
 0x208   : > { %1486 = vset.pattern.permute.xlu1 %v1595_v32 }
 0x20a   : > { %1487 = vset.pattern.permute.xlu2 %v1595_v32 }
 0x23a   : > { %v845_v52 = vpop.permute.xlu2 %844 }
 0x242   : > { %v857_v62 = vpop.permute.xlu2 %856 }
 0x250   : > { %v849_v51 = vpop.permute.xlu0 %848  ;;  %v853_v53 = vpop.permute.xlu1 %852 }
 0x278   : > { %v884_v37 = vpop.f32.mrf.mxu2 }
 0x279   : > { %v903_v49 = vpop.f32.mrf.mxu3  ;;  %v1905_v28 = vadd.f32 %v884_v37, %v845_v52 }
 0x27a   : > { %v1909_v29 = vadd.f32 %v903_v49, %v845_v52 }
 0x27b   : > { %v933_v35 = vmul.f32 %v1905_v28, %v1905_v28 }
 0x27c   : > { %v934_v60 = vmul.f32 %v1909_v29, %v1909_v29 }
 0x280   : > { %v886_v50 = vpop.f32.mrf.mxu2 }
 0x281   : > { %v905_v45 = vpop.f32.mrf.mxu3  ;;  %v1901_v55 = vadd.f32 %v886_v50, %v849_v51 }
 0x282   : > { %v1903_v56 = vadd.f32 %v905_v45, %v849_v51 }
 0x283   : > { %v935_v31 = vmul.f32 %v1901_v55, %v1901_v55  ;;  %v913_v59 = vadd.f32 %v1901_v55, %v1905_v28 }
 0x284   : > { %v936_v58 = vmul.f32 %v1903_v56, %v1903_v56  ;;  %v922_v61 = vadd.f32 %v1903_v56, %v1909_v29 }
 0x285   : > { %v941_v63 = vadd.f32 %v935_v31, %v933_v35  ;;  %v1005_v35 = vpop.permute.xlu1 %1004 }
 0x286   : > { %v950_v5 = vadd.f32 %v936_v58, %v934_v60  ;;  %v1066_v60 = vld [vmem:[%s2058_s4 + $0x8] sm:$0xff] }
 0x287   : > { %1074 = vperm.xlu2 %1487, %v1066_v60  }
 0x288   : > { %v889_v54 = vpop.f32.mrf.mxu2 }
 0x289   : > { %v908_v36 = vpop.f32.mrf.mxu3  ;;  %v1907_v57 = vadd.f32 %v889_v54, %v853_v53 }
 0x28a   : > { %v1911_v32 = vadd.f32 %v908_v36, %v853_v53 }
 0x28b   : > { %v937_v14 = vmul.f32 %v1907_v57, %v1907_v57  ;;  %v914_v3 = vadd.f32 %v913_v59, %v1907_v57  ;;  %v1009_v59 = vpop.permute.xlu2 %1008 }
 0x28c   : > { %v938_v0 = vmul.f32 %v1911_v32, %v1911_v32  ;;  %v923_v6 = vadd.f32 %v922_v61, %v1911_v32 }
 0x28d   : > { %v942_v17 = vadd.f32 %v941_v63, %v937_v14  ;;  %v1065_v14 = vld [vmem:[%s2058_s4] sm:$0xff]  ;;  %v997_v63 = vpop.permute.xlu0 %996 }
 0x28e   : > { %v951_v9 = vadd.f32 %v950_v5, %v938_v0  ;;  %1069 = vperm.xlu1 %1486, %v1065_v14   ;;  %v1001_v5 = vpop.permute.xlu1 %1000 }
 0x290   : > { %v891_v2 = vpop.f32.mrf.mxu2 }
 0x291   : > { %v1930_v1 = vadd.f32 %v891_v2, %v857_v62  ;;  %v910_v4 = vpop.f32.mrf.mxu3 }
 0x292   : > { %v1933_v7 = vadd.f32 %v910_v4, %v857_v62 }
 0x293   : > { %v915_v8 = vadd.f32 %v914_v3, %v1930_v1  ;;  %v939_v46 = vmul.f32 %v1930_v1, %v1930_v1 }
 0x294   : > { %v924_v10 = vadd.f32 %v923_v6, %v1933_v7  ;;  %v940_v18 = vmul.f32 %v1933_v7, %v1933_v7 }
 0x295   : > { %v916_v11 = vrot.slane %v915_v8, 4  ;;  %v943_v12 = vadd.f32 %v942_v17, %v939_v46  ;;  %v1037_v17 = vpop.permute.xlu2 %1036 }
 0x296   : > { %v925_v15 = vrot.slane %v924_v10, 4  ;;  %v952_v16 = vadd.f32 %v951_v9, %v940_v18 }
 0x297   : > { %v917_v13 = vadd.f32 %v916_v11, %v915_v8  ;;  %v944_v19 = vrot.slane %v943_v12, 4 }
 0x298   : > { %v926_v20 = vadd.f32 %v925_v15, %v924_v10  ;;  %v953_v21 = vrot.slane %v952_v16, 4 }
 0x299   : > { %v918_v47 = vrot.slane %v917_v13, 2  ;;  %v945_v22 = vadd.f32 %v944_v19, %v943_v12 }
 0x29a   : > { %v927_v23 = vrot.slane %v926_v20, 2  ;;  %v954_v40 = vadd.f32 %v953_v21, %v952_v16 }
 0x29b   : > { %v919_v24 = vadd.f32 %v918_v47, %v917_v13  ;;  %v946_v25 = vrot.slane %v945_v22, 2 }
 0x29c   : > { %v928_v26 = vadd.f32 %v927_v23, %v926_v20  ;;  %v955_v27 = vrot.slane %v954_v40, 2 }
 0x29d   : > { %v920_v41 = vrot.slane %v919_v24, 1  ;;  %v947_v33 = vadd.f32 %v946_v25, %v945_v22 }
 0x29e   : > { %v929_v42 = vrot.slane %v928_v26, 1  ;;  %v956_v34 = vadd.f32 %v955_v27, %v954_v40 }
 0x29f   : > { %v921_v43 = vadd.f32 %v920_v41, %v919_v24  ;;  %v948_v38 = vrot.slane %v947_v33, 1  ;;  %v1041_v24 = vpop.permute.xlu1 %1040 }
 0x2a0   : > { %v930_v39 = vadd.f32 %v929_v42, %v928_v26  ;;  %v957_v44 = vrot.slane %v956_v34, 1 }
 0x2a1   : > { %v1942_v48 = vmul.f32 %v921_v43, %v1764_v30  ;;  %v949_v37 = vadd.f32 %v948_v38, %v947_v33 }
 0x2a2   : > { %v1945_v49 = vmul.f32 %v930_v39, %v1764_v30  ;;  %v958_v50 = vadd.f32 %v957_v44, %v956_v34 }
 0x2a3   : > { %v959_v45 = vmul.f32 %v949_v37, %v1764_v30  ;;  %v961_v51 = vmul.f32 %v1942_v48, %v1942_v48  ;;  %v993_v46 = vsub.f32 %v1930_v1, %v1942_v48  ;;  %v991_v11 = vsub.f32 %v1907_v57, %v1942_v48 }
 0x2a4   : > { %v960_v52 = vmul.f32 %v958_v50, %v1764_v30  ;;  %v962_v53 = vmul.f32 %v1945_v49, %v1945_v49  ;;  %v994_v10 = vsub.f32 %v1933_v7, %v1945_v49  ;;  %v992_v15 = vsub.f32 %v1911_v32, %v1945_v49 }
 0x2a5   : > { %v963_v54 = vsub.f32 %v959_v45, %v961_v51  ;;  %v987_v16 = vsub.f32 %v1905_v28, %v1942_v48  ;;  %v988_v13 = vsub.f32 %v1909_v29, %v1945_v49  ;;  %v989_v7 = vsub.f32 %v1901_v55, %v1942_v48  ;;  %v1033_v28 = vpop.permute.xlu0 %1032 }
 0x2a6   : > { %v964_v36 = vsub.f32 %v960_v52, %v962_v53  ;;  %v990_v57 = vsub.f32 %v1903_v56, %v1945_v49  ;;  %v1029_v56 = vpop.permute.xlu2 %1028 }
 0x2a7   : > { %v965_v31 = vadd.f32 1e-05, %v963_v54 }
 0x2a8   : > { %v966_v58 = vadd.f32 1e-05, %v964_v36 }
 0x2a9   : > { %1583 = vrsqrt.f32 %v965_v31  ;;  %vm973_vm1 = vweird.f32 %v965_v31 }
 0x2aa   : > { %1585 = vrsqrt.f32 %v966_v58  ;;  %vm983_vm3 = vweird.f32 %v966_v58 }
 0x2af   : > { %v1584_v30 = vpop.eup %1583 }
 0x2b0   : > { %v1586_v61 = vpop.eup %1585  ;;  %v968_v62 = vmul.f32 %v1584_v30, %v965_v31  ;;  %vm974_vm14 = vweird.f32 %v1584_v30 }
 0x2b1   : > { %v978_v0 = vmul.f32 %v1586_v61, %v966_v58  ;;  %vm984_vm15 = vweird.f32 %v1586_v61  ;;  %vm975_vm2 = vmor %vm973_vm1, %vm974_vm14 }
 0x2b2   : > { %v969_v2 = vmul.f32 %v1584_v30, %v968_v62  ;;  %vm985_vm4 = vmor %vm983_vm3, %vm984_vm15 }
 0x2b3   : > { %v979_v3 = vmul.f32 %v1586_v61, %v978_v0 }
 0x2b4   : > { %v970_v4 = vmul.f32 0.5, %v969_v2 }
 0x2b5   : > { %v980_v6 = vmul.f32 0.5, %v979_v3 }
 0x2b6   : > { %v971_v8 = vsub.f32 1.5, %v970_v4 }
 0x2b7   : > { %v981_v9 = vsub.f32 1.5, %v980_v6 }
 0x2b8   : > { %v972_v18 = vmul.f32 %v1584_v30, %v971_v8 }
 0x2b9   : > { %v982_v12 = vmul.f32 %v1586_v61, %v981_v9 }
 0x2ba   : > { %v976_v1 = vsel %vm975_vm2, %v1584_v30, %v972_v18  ;;  %v1445_v30 = vld [vmem:[%s2056_s2] sm:$0xff] }
 0x2bb   : > { %v986_v19 = vsel %vm985_vm4, %v1586_v61, %v982_v12  ;;  %v1015_v20 = vmul.f32 %v1005_v35, %v976_v1  ;;  %v1013_v21 = vmul.f32 %v1001_v5, %v976_v1  ;;  %v1017_v47 = vmul.f32 %v1009_v59, %v976_v1 }
 0x2bc   : > { %v1016_v22 = vmul.f32 %v1005_v35, %v986_v19  ;;  %v1014_v32 = vmul.f32 %v1001_v5, %v986_v19  ;;  %v1018_v23 = vmul.f32 %v1009_v59, %v986_v19  ;;  %v1011_v40 = vmul.f32 %v997_v63, %v976_v1 }
 0x2bd   : > { %v1023_v25 = vmul.f32 %v1015_v20, %v991_v11  ;;  %v1012_v26 = vmul.f32 %v997_v63, %v986_v19  ;;  %v1021_v27 = vmul.f32 %v1013_v21, %v989_v7  ;;  %v1025_v29 = vmul.f32 %v1017_v47, %v993_v46 }
 0x2be   : > { %v1024_v41 = vmul.f32 %v1016_v22, %v992_v15  ;;  %v1019_v33 = vmul.f32 %v1011_v40, %v987_v16  ;;  %v1022_v55 = vmul.f32 %v1014_v32, %v990_v57  ;;  %v1026_v42 = vmul.f32 %v1018_v23, %v994_v10 }
 0x2bf   : > { %v1047_v34 = vadd.f32 %v1037_v17, %v1023_v25  ;;  %v1020_v43 = vmul.f32 %v1012_v26, %v988_v13  ;;  %v1045_v38 = vadd.f32 %v1033_v28, %v1021_v27  ;;  %v1049_v39 = vadd.f32 %v1041_v24, %v1025_v29 }
 0x2c0   : > { %v1048_v44 = vadd.f32 %v1037_v17, %v1024_v41  ;;  %v1043_v48 = vadd.f32 %v1029_v56, %v1019_v33  ;;  %v1046_v37 = vadd.f32 %v1033_v28, %v1022_v55  ;;  %v1050_v49 = vadd.f32 %v1041_v24, %v1026_v42 }
 0x2c1   : > { %v1055_v50 = vmax.f32 %v1047_v34, 0.0  ;;  %v1044_v45 = vadd.f32 %v1029_v56, %v1020_v43  ;;  %v1057_v51 = vmax.f32 %v1049_v39, 0.0  ;;  %v1053_v36 = vmax.f32 %v1045_v38, 0.0 }
 0x2c2   : > { %v1056_v52 = vmax.f32 %v1048_v44, 0.0  ;;  %v1058_v53 = vmax.f32 %v1050_v49, 0.0  ;;  %v1051_v54 = vmax.f32 %v1043_v48, 0.0  ;;  %v1054_v35 = vmax.f32 %v1046_v37, 0.0 }
 0x2c3   : > { %v1063_v31 = vpack.c.bf16 %v1057_v51, %v1055_v50  ;;  %v1052_v58 = vmax.f32 %v1044_v45, 0.0 }
 0x2c4   : > { %v1064_v59 = vpack.c.bf16 %v1058_v53, %v1056_v52  ;;  %v1061_v14 = vpack.c.bf16 %v1053_v36, %v1051_v54 }
 0x2c5   : > { %1091 = vmatpush.bf16.msra.mxu2 %v1063_v31  ;;  %v1062_v60 = vpack.c.bf16 %v1054_v35, %v1052_v58 }
 0x2c6   : > { %1105 = vmatpush.bf16.msra.mxu3 %v1064_v59 }
 0x2c9   : > { %1092 = vmatpush.bf16.msra.mxu2 %v1061_v14 }
 0x2ca   : > { %1106 = vmatpush.bf16.msra.mxu3 %v1062_v60 }
 0x2cc   : > { %1419 = vmatmul.msk.bf16.vlgmr.msra.gmra.mxu2 %vm359_vm0, %v1445_v30 }
 0x2cd   : > { %1420 = vmatmul.msk.bf16.vlgmr.msra.gmra.mxu3 %vm359_vm0, %v1445_v30  ;;  %vm1209_vm0 = vcmask 125952  }
 0x2e1   : > { %v1075_v4 = vpop.permute.xlu2 %1074 }
 0x300   : > { %v1070_v61 = vpop.permute.xlu1 %1069 }
 0x34f   : > { %v1094_v62 = vpop.f32.mrf.mxu2 }
 0x350   : > { %v1095_v0 = vadd.f32 %v1094_v62, %v1070_v61  ;;  %v1108_v2 = vpop.f32.mrf.mxu3 }
 0x351   : > { %v1109_v63 = vadd.f32 %v1108_v2, %v1070_v61 }
 0x353   : > { %v1488_v3 = vpack.i.bf16 %v1109_v63, %v1095_v0 }
 0x355   : > { %1489 = vxpose.xlu1.b32.start [1/2] (short) %v1488_v3, 128 }
 0x357   : > { %v1096_v5 = vpop.f32.mrf.mxu2 }
 0x358   : > { %v1097_v6 = vadd.f32 %v1096_v5, %v1075_v4  ;;  %v1110_v17 = vpop.f32.mrf.mxu3 }
 0x359   : > { %v1111_v8 = vadd.f32 %v1110_v17, %v1075_v4 }
 0x35b   : > { %v1490_v46 = vpack.i.bf16 %v1111_v8, %v1097_v6 }
 0x35d   : > { %1491 = vxpose.xlu1.b32.end [2/2] (short) %v1490_v46, 128 }
 0x3f9   : > { %v1492_v9 = vpop.trf.xlu1 }
 0x3fa   : > { %v1496_v10 = vunpack.i.h.bf16 %v1492_v9  ;;  %v1493_v18 = vunpack.i.l.bf16 %v1492_v9 }
 0x3fc   : > { %v1193_v11 = vpack.c.bf16 %v1496_v10, %v1496_v10  ;;  %v1177_v12 = vpack.c.bf16 %v1493_v18, %v1493_v18 }
 0x3fe   : > { %1226 = vst.msk [vmem:[%s1985_s6 + $0x40] sm:$0xf] %vm1209_vm0, %v1193_v11 }
 0x3ff   : > { %1210 = vst.msk [vmem:[%s1985_s6] sm:$0xf] %vm1209_vm0, %v1177_v12 }
 0x401   : > { %v1497_v15 = vpop.trf.xlu1 }
 0x402   : > { %v1501_v16 = vunpack.i.h.bf16 %v1497_v15  ;;  %v1498_v1 = vunpack.i.l.bf16 %v1497_v15 }
 0x404   : > { %v1194_v13 = vpack.c.bf16 %v1501_v16, %v1501_v16  ;;  %v1178_v7 = vpack.c.bf16 %v1498_v1, %v1498_v1 }
 0x406   : > { %1227 = vst.msk [vmem:[%s1985_s6 + $0x44] sm:$0xf] %vm1209_vm0, %v1194_v13 }
 0x407   : > { %1211 = vst.msk [vmem:[%s1985_s6 + $0x4] sm:$0xf] %vm1209_vm0, %v1178_v7 }
 0x409   : > { %v1502_v57 = vpop.trf.xlu1 }
 0x40a   : > { %v1506_v19 = vunpack.i.h.bf16 %v1502_v57  ;;  %v1503_v20 = vunpack.i.l.bf16 %v1502_v57 }
 0x40c   : > { %v1195_v21 = vpack.c.bf16 %v1506_v19, %v1506_v19  ;;  %v1179_v47 = vpack.c.bf16 %v1503_v20, %v1503_v20 }
 0x40e   : > { %1228 = vst.msk [vmem:[%s1985_s6 + $0x48] sm:$0xf] %vm1209_vm0, %v1195_v21 }
 0x40f   : > { %1212 = vst.msk [vmem:[%s1985_s6 + $0x8] sm:$0xf] %vm1209_vm0, %v1179_v47 }
 0x411   : > { %v1507_v22 = vpop.trf.xlu1 }
 0x412   : > { %v1511_v32 = vunpack.i.h.bf16 %v1507_v22  ;;  %v1508_v23 = vunpack.i.l.bf16 %v1507_v22 }
 0x414   : > { %v1196_v40 = vpack.c.bf16 %v1511_v32, %v1511_v32  ;;  %v1180_v28 = vpack.c.bf16 %v1508_v23, %v1508_v23 }
 0x416   : > { %1229 = vst.msk [vmem:[%s1985_s6 + $0x4c] sm:$0xf] %vm1209_vm0, %v1196_v40 }
 0x417   : > { %1213 = vst.msk [vmem:[%s1985_s6 + $0xc] sm:$0xf] %vm1209_vm0, %v1180_v28 }
 0x419   : > { %v1512_v24 = vpop.trf.xlu1 }
 0x41a   : > { %v1516_v25 = vunpack.i.h.bf16 %v1512_v24  ;;  %v1513_v26 = vunpack.i.l.bf16 %v1512_v24 }
 0x41c   : > { %v1197_v27 = vpack.c.bf16 %v1516_v25, %v1516_v25  ;;  %v1181_v29 = vpack.c.bf16 %v1513_v26, %v1513_v26 }
 0x41e   : > { %1230 = vst.msk [vmem:[%s1985_s6 + $0x50] sm:$0xf] %vm1209_vm0, %v1197_v27 }
 0x41f   : > { %1214 = vst.msk [vmem:[%s1985_s6 + $0x10] sm:$0xf] %vm1209_vm0, %v1181_v29 }
 0x421   : > { %v1517_v41 = vpop.trf.xlu1 }
 0x422   : > { %v1521_v33 = vunpack.i.h.bf16 %v1517_v41  ;;  %v1518_v55 = vunpack.i.l.bf16 %v1517_v41 }
 0x424   : > { %v1198_v42 = vpack.c.bf16 %v1521_v33, %v1521_v33  ;;  %v1182_v34 = vpack.c.bf16 %v1518_v55, %v1518_v55 }
 0x426   : > { %1231 = vst.msk [vmem:[%s1985_s6 + $0x54] sm:$0xf] %vm1209_vm0, %v1198_v42 }
 0x427   : > { %1215 = vst.msk [vmem:[%s1985_s6 + $0x14] sm:$0xf] %vm1209_vm0, %v1182_v34 }
 0x429   : > { %v1522_v56 = vpop.trf.xlu1 }
 0x42a   : > { %v1526_v43 = vunpack.i.h.bf16 %v1522_v56  ;;  %v1523_v38 = vunpack.i.l.bf16 %v1522_v56 }
 0x42c   : > { %v1199_v39 = vpack.c.bf16 %v1526_v43, %v1526_v43  ;;  %v1183_v44 = vpack.c.bf16 %v1523_v38, %v1523_v38 }
 0x42e   : > { %1232 = vst.msk [vmem:[%s1985_s6 + $0x58] sm:$0xf] %vm1209_vm0, %v1199_v39 }
 0x42f   : > { %1216 = vst.msk [vmem:[%s1985_s6 + $0x18] sm:$0xf] %vm1209_vm0, %v1183_v44 }
 0x431   : > { %v1527_v48 = vpop.trf.xlu1 }
 0x432   : > { %v1531_v37 = vunpack.i.h.bf16 %v1527_v48  ;;  %v1528_v49 = vunpack.i.l.bf16 %v1527_v48 }
 0x434   : > { %v1200_v50 = vpack.c.bf16 %v1531_v37, %v1531_v37  ;;  %v1184_v45 = vpack.c.bf16 %v1528_v49, %v1528_v49 }
 0x436   : > { %1233 = vst.msk [vmem:[%s1985_s6 + $0x5c] sm:$0xf] %vm1209_vm0, %v1200_v50 }
 0x437   : > { %1217 = vst.msk [vmem:[%s1985_s6 + $0x1c] sm:$0xf] %vm1209_vm0, %v1184_v45 }
 0x439   : > { %v1532_v51 = vpop.trf.xlu1 }
 0x43a   : > { %v1536_v52 = vunpack.i.h.bf16 %v1532_v51  ;;  %v1533_v53 = vunpack.i.l.bf16 %v1532_v51 }
 0x43c   : > { %v1201_v54 = vpack.c.bf16 %v1536_v52, %v1536_v52  ;;  %v1185_v36 = vpack.c.bf16 %v1533_v53, %v1533_v53 }
 0x43e   : > { %1234 = vst.msk [vmem:[%s1985_s6 + $0x60] sm:$0xf] %vm1209_vm0, %v1201_v54 }
 0x43f   : > { %1218 = vst.msk [vmem:[%s1985_s6 + $0x20] sm:$0xf] %vm1209_vm0, %v1185_v36 }
 0x441   : > { %v1537_v31 = vpop.trf.xlu1 }
 0x442   : > { %v1541_v58 = vunpack.i.h.bf16 %v1537_v31  ;;  %v1538_v35 = vunpack.i.l.bf16 %v1537_v31 }
 0x444   : > { %v1202_v59 = vpack.c.bf16 %v1541_v58, %v1541_v58  ;;  %v1186_v14 = vpack.c.bf16 %v1538_v35, %v1538_v35 }
 0x446   : > { %1235 = vst.msk [vmem:[%s1985_s6 + $0x64] sm:$0xf] %vm1209_vm0, %v1202_v59 }
 0x447   : > { %1219 = vst.msk [vmem:[%s1985_s6 + $0x24] sm:$0xf] %vm1209_vm0, %v1186_v14 }
 0x449   : > { %v1542_v60 = vpop.trf.xlu1 }
 0x44a   : > { %v1546_v30 = vunpack.i.h.bf16 %v1542_v60  ;;  %v1543_v61 = vunpack.i.l.bf16 %v1542_v60 }
 0x44c   : > { %v1203_v62 = vpack.c.bf16 %v1546_v30, %v1546_v30  ;;  %v1187_v0 = vpack.c.bf16 %v1543_v61, %v1543_v61 }
 0x44e   : > { %1236 = vst.msk [vmem:[%s1985_s6 + $0x68] sm:$0xf] %vm1209_vm0, %v1203_v62 }
 0x44f   : > { %1220 = vst.msk [vmem:[%s1985_s6 + $0x28] sm:$0xf] %vm1209_vm0, %v1187_v0 }
 0x451   : > { %v1547_v2 = vpop.trf.xlu1 }
 0x452   : > { %v1551_v63 = vunpack.i.h.bf16 %v1547_v2  ;;  %v1548_v3 = vunpack.i.l.bf16 %v1547_v2 }
 0x454   : > { %v1204_v4 = vpack.c.bf16 %v1551_v63, %v1551_v63  ;;  %v1188_v5 = vpack.c.bf16 %v1548_v3, %v1548_v3 }
 0x456   : > { %1237 = vst.msk [vmem:[%s1985_s6 + $0x6c] sm:$0xf] %vm1209_vm0, %v1204_v4 }
 0x457   : > { %1221 = vst.msk [vmem:[%s1985_s6 + $0x2c] sm:$0xf] %vm1209_vm0, %v1188_v5 }
 0x459   : > { %v1552_v6 = vpop.trf.xlu1 }
 0x45a   : > { %v1556_v17 = vunpack.i.h.bf16 %v1552_v6  ;;  %v1553_v8 = vunpack.i.l.bf16 %v1552_v6 }
 0x45c   : > { %v1205_v46 = vpack.c.bf16 %v1556_v17, %v1556_v17  ;;  %v1189_v9 = vpack.c.bf16 %v1553_v8, %v1553_v8 }
 0x45e   : > { %1238 = vst.msk [vmem:[%s1985_s6 + $0x70] sm:$0xf] %vm1209_vm0, %v1205_v46 }
 0x45f   : > { %1222 = vst.msk [vmem:[%s1985_s6 + $0x30] sm:$0xf] %vm1209_vm0, %v1189_v9 }
 0x461   : > { %v1557_v10 = vpop.trf.xlu1 }
 0x462   : > { %v1561_v18 = vunpack.i.h.bf16 %v1557_v10  ;;  %v1558_v11 = vunpack.i.l.bf16 %v1557_v10 }
 0x464   : > { %v1206_v12 = vpack.c.bf16 %v1561_v18, %v1561_v18  ;;  %v1190_v15 = vpack.c.bf16 %v1558_v11, %v1558_v11 }
 0x466   : > { %1239 = vst.msk [vmem:[%s1985_s6 + $0x74] sm:$0xf] %vm1209_vm0, %v1206_v12 }
 0x467   : > { %1223 = vst.msk [vmem:[%s1985_s6 + $0x34] sm:$0xf] %vm1209_vm0, %v1190_v15 }
 0x469   : > { %v1562_v16 = vpop.trf.xlu1 }
 0x46a   : > { %v1566_v1 = vunpack.i.h.bf16 %v1562_v16  ;;  %v1563_v13 = vunpack.i.l.bf16 %v1562_v16 }
 0x46c   : > { %v1207_v7 = vpack.c.bf16 %v1566_v1, %v1566_v1  ;;  %v1191_v57 = vpack.c.bf16 %v1563_v13, %v1563_v13 }
 0x46e   : > { %1240 = vst.msk [vmem:[%s1985_s6 + $0x78] sm:$0xf] %vm1209_vm0, %v1207_v7 }
 0x46f   : > { %1224 = vst.msk [vmem:[%s1985_s6 + $0x38] sm:$0xf] %vm1209_vm0, %v1191_v57 }
 0x471   : > { %v1567_v19 = vpop.trf.xlu1 }
 0x472   : > { %v1571_v20 = vunpack.i.h.bf16 %v1567_v19  ;;  %v1568_v21 = vunpack.i.l.bf16 %v1567_v19 }
 0x474   : > { %v1208_v47 = vpack.c.bf16 %v1571_v20, %v1571_v20  ;;  %v1192_v22 = vpack.c.bf16 %v1568_v21, %v1568_v21 }
 0x476   : > { %1241 = vst.msk [vmem:[%s1985_s6 + $0x7c] sm:$0xf] %vm1209_vm0, %v1208_v47 }
 0x477   : > { %1225 = vst.msk [vmem:[%s1985_s6 + $0x3c] sm:$0xf] %vm1209_vm0, %v1192_v22 }
 0x478 PF: > { %s15_s18 = sadd.s32 1, %s1593_s18  }
 0x479   : > { %p12_p4 = scmp.ge.s32.totalorder %s15_s18, 4  }
 0x47b   :  { %14 = sbr.rel (!%p12_p4) target bundleno = 1 (0x1), region = 72 }

</bundles_post_ra>
